<compile_context>
chip_gen: v7x
topology: tpu7x:2x2x1
jax: 0.10.0
libtpu: 0.0.40
codegen_flags: <defaults>
</compile_context>

<pallas_src>
import functools

import jax
import jax.numpy as jnp
from jax.experimental import pallas as pl
from jax.experimental.pallas import tpu as pltpu

F32 = jnp.float32

_TARGET_BLOCK_BYTES = 8 * 1024 * 1024   # per-step x window; x2 for double-buffering


# =============================== kernel ======================================
def _channel_attention_kernel(inv_n, x_ref, w1t_ref, w2t_ref, o_ref,
                              sum_sc, max_sc):
    # x_ref  : (Bt, C, Nt)  -- batch block, spatial chunk on lanes
    # w1t_ref: (C, Ch)      -- first 1x1 conv weight, transposed
    # w2t_ref: (Ch, C)      -- second 1x1 conv weight, transposed
    # o_ref  : (1, Bt, C)   -- sigmoid(mlp(avg) + mlp(max)), lane-dense (C on lanes)
    # sum_sc / max_sc: (Bt, C) f32 running spatial accumulators
    n = pl.program_id(1)

    @pl.when(n == 0)
    def _init():
        sum_sc[...] = jnp.zeros_like(sum_sc)
        max_sc[...] = jnp.full_like(max_sc, -jnp.inf)

    x = x_ref[...].astype(F32)                               # (Bt, C, Nt)
    sum_sc[...] += jnp.sum(x, axis=2)                        # (Bt, C)
    max_sc[...] = jnp.maximum(max_sc[...], jnp.max(x, axis=2))

    @pl.when(n == pl.num_programs(1) - 1)
    def _finalize():
        avg = sum_sc[...] * inv_n                            # AdaptiveAvgPool2d(1)
        mx = max_sc[...]                                     # AdaptiveMaxPool2d(1)
        w1t = w1t_ref[...].astype(F32)                       # (C, Ch)
        w2t = w2t_ref[...].astype(F32)                       # (Ch, C)

        def mlp(v):                                          # (Bt, C) -> (Bt, C)
            h = jnp.maximum(
                jnp.dot(v, w1t, preferred_element_type=F32), 0.0)     # (Bt, Ch)
            return jnp.dot(h, w2t, preferred_element_type=F32)        # (Bt, C)

        o_ref[0] = jax.nn.sigmoid(mlp(avg) + mlp(mx))        # (Bt, C) lane-dense store


# ============================ block selection ================================
def _largest_divisor_leq(n, cap):
    cap = max(1, min(n, cap))
    for d in range(cap, 0, -1):
        if n % d == 0:
            return d
    return 1


def _choose_blocks(B, C, N, itemsize):
    row_bytes = C * N * itemsize
    # Spatial chunking (reduction grid axis) only when one batch row is too big.
    if row_bytes <= _TARGET_BLOCK_BYTES or C % 8 != 0 or N % 128 != 0:
        # TODO(synk): if C % 8 != 0 (or N has no 128-aligned divisor) AND one
        # row exceeds VMEM, a padded staging copy would be needed; not hit here.
        nt = N
    else:
        lane_budget = max(128, (_TARGET_BLOCK_BYTES // (C * itemsize)) // 128 * 128)
        nt = N
        for d in range(lane_budget, 0, -128):
            if N % d == 0:
                nt = d
                break
    # Batch blocking: as big as the target allows, but keep >= 2 grid steps when
    # B >= 2 so the "parallel" batch axis can shard across v7x's 2 TensorCores.
    bt_cap = max(1, _TARGET_BLOCK_BYTES // max(1, C * nt * itemsize))
    if B >= 2:
        bt_cap = min(bt_cap, -(-B // 2))
    bt = _largest_divisor_leq(B, bt_cap)
    return bt, nt


# =============================== wrapper =====================================
def channel_attention(x_nchw, w1, w2):
    """x_nchw: (B, C, H, W) f32/bf16; w1: (Ch, C); w2: (C, Ch). Returns (B, C, 1, 1) f32."""
    B, C, H, W = x_nchw.shape
    N = H * W
    Ch = w1.shape[0]
    itemsize = jnp.dtype(x_nchw.dtype).itemsize

    bt, nt = _choose_blocks(B, C, N, itemsize)
    nb = B // bt
    nn = N // nt

    x = x_nchw.reshape(B, C, N)          # contiguous reshape: no data movement
    w1t = jnp.transpose(w1)              # (C, Ch): pooled @ w1t
    w2t = jnp.transpose(w2)              # (Ch, C): hidden @ w2t  (no in-kernel transposes)

    kernel = functools.partial(_channel_attention_kernel, float(1.0 / N))

    # Advisory cost hint for XLA's scheduler (mem-bound: ~3 ops per element).
    cost = pl.CostEstimate(
        flops=3 * B * C * N + 8 * B * C * Ch,
        transcendentals=B * C,
        bytes_accessed=B * C * N * itemsize + 2 * C * Ch * 4 + B * C * 4,
    )

    # Scoped-VMEM budget: double-buffered x window + out + weights + scratch.
    vmem_needed = (2 * bt * C * nt * itemsize
                   + 2 * bt * C * 4
                   + 2 * 2 * C * Ch * 4
                   + 2 * bt * C * 4
                   + (2 << 20))
    vmem_limit = int(min(max(vmem_needed, 32 << 20), 64 << 20))

    out = pl.pallas_call(
        kernel,
        out_shape=jax.ShapeDtypeStruct((nb, bt, C), F32),
        grid=(nb, nn),
        in_specs=[
            pl.BlockSpec((bt, C, nt), lambda b, n: (b, 0, n)),
            pl.BlockSpec((C, Ch), lambda b, n: (0, 0)),
            pl.BlockSpec((Ch, C), lambda b, n: (0, 0)),
        ],
        out_specs=pl.BlockSpec((1, bt, C), lambda b, n: (b, 0, 0)),
        scratch_shapes=[
            pltpu.VMEM((bt, C), F32),    # running spatial sum
            pltpu.VMEM((bt, C), F32),    # running spatial max
        ],
        compiler_params=pltpu.CompilerParams(
            dimension_semantics=("parallel", "arbitrary"),
            vmem_limit_bytes=vmem_limit,
        ),
        cost_estimate=cost,
    )(x, w1t, w2t)
    return out.reshape(B, C, 1, 1)


# =============================== reference ===================================
def channel_attention_ref(x, w1, w2):
    """Pure-JAX reference of the PyTorch forward (for correctness checking)."""
    B, C, H, W = x.shape
    avg = jnp.mean(x, axis=(2, 3))                    # (B, C)
    mx = jnp.max(x, axis=(2, 3))                      # (B, C)

    def mlp(v):
        h = jnp.maximum(v @ w1.T, 0.0)                # (B, Ch)
        return h @ w2.T                               # (B, C)

    return jax.nn.sigmoid(mlp(avg) + mlp(mx)).reshape(B, C, 1, 1)


# ================================ main =======================================
if __name__ == "__main__":
    B, C, H, W = 2, 32, 16, 16
    ratio = 8
    Ch = max(1, C // ratio)

    key = jax.random.PRNGKey(0)
    kx, k1, k2 = jax.random.split(key, 3)
    x = jax.random.normal(kx, (B, C, H, W), F32)
    # Conv2d(in_planes, hidden_planes, 1, bias=False) weight -> (Ch, C)
    w1 = (1.0 / jnp.sqrt(C)) * jax.random.normal(k1, (Ch, C), F32)
    # Conv2d(hidden_planes, in_planes, 1, bias=False) weight -> (C, Ch)
    w2 = (1.0 / jnp.sqrt(Ch)) * jax.random.normal(k2, (C, Ch), F32)

    fwd = jax.jit(channel_attention)
    out = fwd(x, w1, w2)
    jax.block_until_ready(out)

    ref = channel_attention_ref(x, w1, w2)
    assert out.shape == (B, C, 1, 1), out.shape
    assert bool(jnp.all(jnp.isfinite(out)))
    assert bool(jnp.allclose(out, ref, atol=1e-5, rtol=1e-5)), (
        float(jnp.max(jnp.abs(out - ref))))

    # bf16 activations: kernel reads bf16 (half the HBM traffic), upcasts in VMEM.
    x_bf16 = x.astype(jnp.bfloat16)
    out_bf16 = fwd(x_bf16, w1, w2)
    jax.block_until_ready(out_bf16)
    ref_bf16 = channel_attention_ref(x_bf16.astype(F32), w1, w2)
    assert bool(jnp.allclose(out_bf16, ref_bf16, atol=1e-5, rtol=1e-5)), (
        float(jnp.max(jnp.abs(out_bf16 - ref_bf16))))

    print("KERNEL_OK")
</pallas_src>

<mosaic_0001>
module attributes {stable_mosaic.version = 11 : i64} {
  func.func @_channel_attention_kernel(%arg0: i32, %arg1: i32, %arg2: memref<1x32x256xf32, #tpu.memory_space<vmem>>, %arg3: memref<32x4xf32, #tpu.memory_space<vmem>>, %arg4: memref<4x32xf32, #tpu.memory_space<vmem>>, %arg5: memref<1x1x32xf32, #tpu.memory_space<vmem>>, %arg6: memref<1x32xf32, #tpu.memory_space<vmem>>, %arg7: memref<1x32xf32, #tpu.memory_space<vmem>>) attributes {dimension_semantics = [#tpu.dimension_semantics<parallel>, #tpu.dimension_semantics<arbitrary>], iteration_bounds = array<i64: 2, 1>, scalar_prefetch = 0 : i64, scratch_operands = 2 : i64, tpu.core_type = #tpu.core_type<tc>, window_params = [{transform_indices = @transform_0, window_bounds = array<i64: 1, 32, 256>}, {pipeline_mode = #tpu.pipeline_mode<synchronous>, transform_indices = @transform_1, window_bounds = array<i64: 32, 4>}, {pipeline_mode = #tpu.pipeline_mode<synchronous>, transform_indices = @transform_2, window_bounds = array<i64: 4, 32>}, {transform_indices = @transform_3, window_bounds = array<i64: 1, 1, 32>}]} {
    %c0_i32 = arith.constant 0 : i32
    %0 = arith.cmpi eq, %arg1, %c0_i32 : i32
    %1 = arith.extui %0 : i1 to i32
    %c0_i32_0 = arith.constant 0 : i32
    %2 = arith.cmpi ne, %1, %c0_i32_0 : i32
    scf.if %2 {
      %cst_14 = arith.constant 0.000000e+00 : f32
      %15 = vector.broadcast %cst_14 : f32 to vector<1x32xf32>
      %c0_15 = arith.constant 0 : index
      %c0_16 = arith.constant 0 : index
      %16 = vector.load %arg6[%c0_15, %c0_16] : memref<1x32xf32, #tpu.memory_space<vmem>>, vector<1x32xf32>
      tpu.vector_store %arg6[%c0_15, %c0_16], %15 {strides = array<i32>} : memref<1x32xf32, #tpu.memory_space<vmem>>, vector<1x32xf32>,
      %cst_17 = arith.constant 0xFF800000 : f32
      %17 = vector.broadcast %cst_17 : f32 to vector<1x32xf32>
      %c0_18 = arith.constant 0 : index
      %c0_19 = arith.constant 0 : index
      %18 = vector.load %arg7[%c0_18, %c0_19] : memref<1x32xf32, #tpu.memory_space<vmem>>, vector<1x32xf32>
      tpu.vector_store %arg7[%c0_18, %c0_19], %17 {strides = array<i32>} : memref<1x32xf32, #tpu.memory_space<vmem>>, vector<1x32xf32>,
    } else {
    }
    %c0 = arith.constant 0 : index
    %c0_1 = arith.constant 0 : index
    %c0_2 = arith.constant 0 : index
    %3 = vector.load %arg2[%c0, %c0_1, %c0_2] : memref<1x32x256xf32, #tpu.memory_space<vmem>>, vector<1x32x256xf32>
    %c0_3 = arith.constant 0 : index
    %c0_4 = arith.constant 0 : index
    %4 = vector.load %arg6[%c0_3, %c0_4] : memref<1x32xf32, #tpu.memory_space<vmem>>, vector<1x32xf32>
    %cst = arith.constant dense<0.000000e+00> : vector<1x32xf32>
    %5 = vector.multi_reduction <add>, %3, %cst [2] : vector<1x32x256xf32> to vector<1x32xf32>
    %6 = arith.addf %4, %5 : vector<1x32xf32>
    %c0_5 = arith.constant 0 : index
    %c0_6 = arith.constant 0 : index
    %7 = vector.load %arg6[%c0_5, %c0_6] : memref<1x32xf32, #tpu.memory_space<vmem>>, vector<1x32xf32>
    tpu.vector_store %arg6[%c0_5, %c0_6], %6 {strides = array<i32>} : memref<1x32xf32, #tpu.memory_space<vmem>>, vector<1x32xf32>,
    %c0_7 = arith.constant 0 : index
    %c0_8 = arith.constant 0 : index
    %8 = vector.load %arg7[%c0_7, %c0_8] : memref<1x32xf32, #tpu.memory_space<vmem>>, vector<1x32xf32>
    %cst_9 = arith.constant dense<0xFF800000> : vector<1x32xf32>
    %9 = vector.multi_reduction <maximumf>, %3, %cst_9 [2] : vector<1x32x256xf32> to vector<1x32xf32>
    %10 = arith.maximumf %8, %9 : vector<1x32xf32>
    %c0_10 = arith.constant 0 : index
    %c0_11 = arith.constant 0 : index
    %11 = vector.load %arg7[%c0_10, %c0_11] : memref<1x32xf32, #tpu.memory_space<vmem>>, vector<1x32xf32>
    tpu.vector_store %arg7[%c0_10, %c0_11], %10 {strides = array<i32>} : memref<1x32xf32, #tpu.memory_space<vmem>>, vector<1x32xf32>,
    %c0_i32_12 = arith.constant 0 : i32
    %12 = arith.cmpi eq, %arg1, %c0_i32_12 : i32
    %13 = arith.extui %12 : i1 to i32
    %c0_i32_13 = arith.constant 0 : i32
    %14 = arith.cmpi ne, %13, %c0_i32_13 : i32
    scf.if %14 {
      %c0_14 = arith.constant 0 : index
      %c0_15 = arith.constant 0 : index
      %15 = vector.load %arg6[%c0_14, %c0_15] : memref<1x32xf32, #tpu.memory_space<vmem>>, vector<1x32xf32>
      %cst_16 = arith.constant 3.906250e-03 : f32
      %16 = vector.broadcast %cst_16 : f32 to vector<1x32xf32>
      %17 = arith.mulf %15, %16 : vector<1x32xf32>
      %c0_17 = arith.constant 0 : index
      %c0_18 = arith.constant 0 : index
      %18 = vector.load %arg7[%c0_17, %c0_18] : memref<1x32xf32, #tpu.memory_space<vmem>>, vector<1x32xf32>
      %c0_19 = arith.constant 0 : index
      %c0_20 = arith.constant 0 : index
      %19 = vector.load %arg3[%c0_19, %c0_20] : memref<32x4xf32, #tpu.memory_space<vmem>>, vector<32x4xf32>
      %c0_21 = arith.constant 0 : index
      %c0_22 = arith.constant 0 : index
      %20 = vector.load %arg4[%c0_21, %c0_22] : memref<4x32xf32, #tpu.memory_space<vmem>>, vector<4x32xf32>
      %cst_23 = arith.constant dense<0.000000e+00> : vector<1x4xf32>
      %21 = tpu.matmul %17, %19, %cst_23 {dimension_numbers = #tpu.dot_dimension_numbers<[1], [0], [0], [1], [0, 0, 1, 1], [], []>} : vector<1x32xf32>, vector<32x4xf32>, vector<1x4xf32> -> vector<1x4xf32>
      %cst_24 = arith.constant 0.000000e+00 : f32
      %22 = vector.broadcast %cst_24 : f32 to vector<1x4xf32>
      %23 = arith.maximumf %21, %22 : vector<1x4xf32>
      %cst_25 = arith.constant dense<0.000000e+00> : vector<1x32xf32>
      %24 = tpu.matmul %23, %20, %cst_25 {dimension_numbers = #tpu.dot_dimension_numbers<[1], [0], [0], [1], [0, 0, 1, 1], [], []>} : vector<1x4xf32>, vector<4x32xf32>, vector<1x32xf32> -> vector<1x32xf32>
      %cst_26 = arith.constant dense<0.000000e+00> : vector<1x4xf32>
      %25 = tpu.matmul %18, %19, %cst_26 {dimension_numbers = #tpu.dot_dimension_numbers<[1], [0], [0], [1], [0, 0, 1, 1], [], []>} : vector<1x32xf32>, vector<32x4xf32>, vector<1x4xf32> -> vector<1x4xf32>
      %cst_27 = arith.constant 0.000000e+00 : f32
      %26 = vector.broadcast %cst_27 : f32 to vector<1x4xf32>
      %27 = arith.maximumf %25, %26 : vector<1x4xf32>
      %cst_28 = arith.constant dense<0.000000e+00> : vector<1x32xf32>
      %28 = tpu.matmul %27, %20, %cst_28 {dimension_numbers = #tpu.dot_dimension_numbers<[1], [0], [0], [1], [0, 0, 1, 1], [], []>} : vector<1x4xf32>, vector<4x32xf32>, vector<1x32xf32> -> vector<1x32xf32>
      %29 = arith.addf %24, %28 : vector<1x32xf32>
      %30 = arith.negf %29 : vector<1x32xf32>
      %31 = math.exp %30 : vector<1x32xf32>
      %cst_29 = arith.constant 1.000000e+00 : f32
      %32 = vector.broadcast %cst_29 : f32 to vector<1x32xf32>
      %33 = arith.addf %32, %31 : vector<1x32xf32>
      %34 = arith.divf %32, %33 : vector<1x32xf32>
      %c0_30 = arith.constant 0 : index
      %c0_31 = arith.constant 0 : index
      %c0_32 = arith.constant 0 : index
      %35 = vector.load %arg5[%c0_30, %c0_31, %c0_32] : memref<1x1x32xf32, #tpu.memory_space<vmem>>, vector<1x1x32xf32>
      %36 = vector.shape_cast %35 : vector<1x1x32xf32> to vector<1x32xf32>
      %37 = vector.shape_cast %34 : vector<1x32xf32> to vector<1x1x32xf32>
      tpu.vector_store %arg5[%c0_30, %c0_31, %c0_32], %37 {strides = array<i32>} : memref<1x1x32xf32, #tpu.memory_space<vmem>>, vector<1x1x32xf32>,
    } else {
    }
    return
  }
  func.func @transform_0(%arg0: i32, %arg1: i32) -> (i32, i32, i32) {
    %c0_i32 = arith.constant 0 : i32
    %c0_i32_0 = arith.constant 0 : i32
    return %arg0, %c0_i32, %arg1 : i32, i32, i32
  }
  func.func @transform_1(%arg0: i32, %arg1: i32) -> (i32, i32) {
    %c0_i32 = arith.constant 0 : i32
    %c0_i32_0 = arith.constant 0 : i32
    %c0_i32_1 = arith.constant 0 : i32
    return %c0_i32, %c0_i32_0 : i32, i32
  }
  func.func @transform_2(%arg0: i32, %arg1: i32) -> (i32, i32) {
    %c0_i32 = arith.constant 0 : i32
    %c0_i32_0 = arith.constant 0 : i32
    %c0_i32_1 = arith.constant 0 : i32
    return %c0_i32, %c0_i32_0 : i32, i32
  }
  func.func @transform_3(%arg0: i32, %arg1: i32) -> (i32, i32, i32) {
    %c0_i32 = arith.constant 0 : i32
    %c0_i32_0 = arith.constant 0 : i32
    %c0_i32_1 = arith.constant 0 : i32
    return %arg0, %c0_i32, %c0_i32_0 : i32, i32, i32
  }
}

</mosaic_0001>

<bundles_post_ra>
// kernel: channel_attention.1
= control target key start
LH: loop header
LB: loop body
LE: loop exit
PB: predicated region body
PF: predicated region fallthrough
CT: control target
= control target key end

     0   :  { %8 = vsyncpa [#allocation5], 0  ;;  %s1951_s0 = inlined_call_operand.vmem [shape: f32[2,32,256], index: 0, kind: input, shape index: {}]   ;;  %s1952_s1 = inlined_call_operand.vmem [shape: f32[32,4], index: 1, kind: input, shape index: {}]   ;;  %s1953_s2 = inlined_call_operand.vmem [shape: f32[4,32], index: 2, kind: input, shape index: {}]   ;;  %s1954_s3 = inlined_call_operand.hbm [shape: f32[2,1,32], index: 3, kind: output, shape index: {}]  }
   0x1   :  { %10 = vsyncpa [#allocation5 + $0x1], 0  ;;  %s1649_s12 = smov 0   ;;  %s1651_s13 = smov 0  }
   0x2   :  { %s1653_s14 = smov 0   ;;  %s1655_s15 = smov 0  }
   0x3   :  { %s1657_s16 = smov 0   ;;  %s1659_s17 = smov 0  }
   0x4 LB: > { %s1398_s18 = sadd.s32 4294967295, %s1620_s17   ;;  %s1399_s19 = sadd.s32 4294967294, %s1620_s17   ;;  %s1620_s17 = sphi %s1659_s17, %s16_s17   ;;  %s1616_s16 = sphi %s1657_s16, %s1961_s16   ;;  %s1612_s15 = sphi %s1655_s15, %s1960_s15   ;;  %s1608_s14 = sphi %s1653_s14, %s1959_s14   ;;  %s1604_s13 = sphi %s1651_s13, %s1958_s13   ;;  %s1600_s12 = sphi %s1649_s12, %s1957_s12  }
   0x5   : > { %s28_s20 = sadd.s32 1, %s1616_s16  ;;  %s105_s21 = sadd.s32 1, %s1608_s14 }
   0x6   : > { %p30_p0 = scmp.ge.s32.totalorder %s28_s20, 2  ;;  %p115_p1 = scmp.ne.s32.totalorder %s1608_s14, %s1604_s13 }
   0x7   : > { %p116_p2 = scmp.eq.s32.totalorder %s1398_s18, 1  ;;  %p121_p3 = scmp.ne.s32.totalorder %s1604_s13, %s1600_s12 }
   0x8   : > { %s1963_s20 = smov (%p30_p0, %s28_s20), 0  ;;  %p122_p5 = scmp.eq.s32.totalorder %s1399_s19, 1 }
   0x9   : > { %p1689_p4 = por %p116_p2, %p115_p1  ;;  %s102_s23 = ssub.s32 %s1616_s16, %s1963_s20 }
   0xa   : > { %p1402_p6 = scmp.ge.s32.totalorder %s1620_s17, 1  ;;  %p103_p7 = scmp.eq.s32.totalorder %s102_s23, 0 }
   0xb   : > { %p1696_p8 = por %p122_p5, %p121_p3  ;;  %p159_p9 = scmp.lt.s32.totalorder %s1620_s17, 3 }
   0xc   : > { %s1702_s25 = scalar_select %p103_p7, %s1608_s14, %s105_s21  }
   0xd   : > { %p160_p10 = pnand %p1402_p6, %p159_p9 }
   0xe   : > { %p187_p11 = scmp.lt.s32.totalorder (!%p160_p10), %s1612_s15, 1  ;;  %v1622_v16 = vmov (!%p160_p10), 0   ;;  %v228_v17 = vlaneseq (!%p160_p10)  ;;  %v1623_v18 = vmov (!%p160_p10), 1966171168   ;;  %vm200_vm0 = vcmask (!%p160_p10), 253952   ;;  %s184_s21 = sand.u32 (!%p160_p10), 1, %s1604_s13  }
   0xf   : > { %163 = sbr.rel (%p160_p10) target bundleno = 833 (0x341), region = 32  ;;  %1536 = vset.pattern.permute.xlu0 (!%p160_p10), %v1622_v16  ;;  %1537 = vset.pattern.permute.xlu1 (!%p160_p10), %v1622_v16  ;;  %v361_v19 = vunpack.c.l.s4 (!%p160_p10), %v1623_v18  ;;  %vm1627_vm1 = vmmov (!%p160_p10), 0   ;;  %vm575_vm2 = vcmask (!%p160_p10), 130112   ;;  %vm582_vm3 = vcmask (!%p160_p10), 195712   ;;  %s1412_s23 = sshll.u32 (!%p160_p10), %s1612_s15, 4 }
  0x10   : > { %v1710_v20 = vshrl.u32 (!%p160_p10), %v228_v17, 7  ;;  %vm589_vm4 = vcmask (!%p160_p10), 261312   ;;  %vm1009_vm5 = vcmask (!%p160_p10), 261120   ;;  %vm1162_vm6 = vcmask (!%p160_p10), 1043456   ;;  %s1317_s4 = scalar_lea.sflag (!%p160_p10), [#allocation5], %s184_s21 }
  0x11   : > { %v362_v21 = vunpack.c.0.s8 (!%p160_p10), %v361_v19  ;;  %vm1158_vm7 = vcmask (!%p160_p10), 31744  }
  0x12   : > { %v1713_v22 = vsub.s32 (!%p160_p10), 0, %v1710_v20  ;;  %v1716_v23 = vsub.s32 (!%p160_p10), 1, %v1710_v20  ;;  %v1719_v24 = vsub.s32 (!%p160_p10), 2, %v1710_v20  ;;  %v1722_v25 = vsub.s32 (!%p160_p10), 3, %v1710_v20 }
  0x13   : > { %v1725_v26 = vsub.s32 (!%p160_p10), 4, %v1710_v20  ;;  %v1728_v27 = vsub.s32 (!%p160_p10), 5, %v1710_v20  ;;  %v1731_v28 = vsub.s32 (!%p160_p10), 6, %v1710_v20  ;;  %v1734_v29 = vsub.s32 (!%p160_p10), 7, %v1710_v20 }
  0x14   : > { %v1737_v31 = vsub.s32 (!%p160_p10), %v362_v21, %v1710_v20 }
  0x16   : > { %s188_s26 = scalar_select %p187_p11, %s1612_s15, 1 }
  0x17   : > { %s1628_s15 = smov [#allocation4]  }
  0x18   : > { %s1415_s27 = sshll.u32 %s188_s26, 6  ;;  %s185_s26 = scalar_lea.vmem [#allocation4], %s184_s21 }
  0x19   : > { %s194_s30 = scalar_lea.vmem %s1951_s0, %s1415_s27  ;;  %s1329_s27 = sshll.u32 %s185_s26, 4  ;;  %s1905_s27 = int_to_ptr.vmem [resolvable:$true] %s1329_s27 }
  0x1a   : > { %v203_v0 = vld [vmem:[%s194_s30] sm:$0xff]  ;;  %v204_v1 = vld [vmem:[%s194_s30 + $0x8] sm:$0xff]  ;;  %v205_v2 = vld [vmem:[%s194_s30 + $0x10] sm:$0xff]  ;;  %s1542_s5 = scalar_lea.vmem %s1905_s27, 16  ;;  %s1546_s6 = sshll.u32 %s1628_s15, 4  ;;  %s1547_s6 = int_to_ptr.vmem [resolvable:$false] %s1546_s6 }
  0x1b   : > { %v212_v3 = vadd.f32 %v204_v1, %v203_v0  ;;  %v206_v4 = vld [vmem:[%s194_s30 + $0x18] sm:$0xff]  ;;  %v207_v5 = vld [vmem:[%s194_s30 + $0x20] sm:$0xff]  ;;  %v208_v6 = vld [vmem:[%s194_s30 + $0x28] sm:$0xff]  ;;  %v610_v12 = vmax.f32 %v203_v0, %v204_v1  ;;  %p1543_p12 = scmp.ne.s32.totalorder %s1905_s27, %s1542_s5  ;;  %s1548_s7 = scalar_lea.vmem %s1547_s6, 32 }
  0x1c   : > { %v218_v7 = vadd.f32 %v208_v6, %v207_v5  ;;  %v209_v8 = vld [vmem:[%s194_s30 + $0x30] sm:$0xff]  ;;  %v210_v9 = vld [vmem:[%s194_s30 + $0x38] sm:$0xff]  ;;  %v215_v10 = vadd.f32 %v206_v4, %v205_v2  ;;  %v613_v13 = vmax.f32 %v205_v2, %v206_v4  ;;  %v616_v14 = vmax.f32 %v207_v5, %v208_v6  ;;  %s1903_s30 = scalar_lea.hbm %s1954_s3, %s1412_s23  ;;  %p1549_p1 = scmp.lt.s32.totalorder %s1905_s27, %s1547_s6 }
  0x1d   : > { %213 = vadd.xlane.f32.xlu0 %v212_v3  ;;  %v221_v11 = vadd.f32 %v210_v9, %v209_v8  ;;  %v619_v15 = vmax.f32 %v209_v8, %v210_v9  ;;  %p1544_p13 = pnand %p1543_p12, %p1689_p4  ;;  %p1550_p2 = scmp.lt.s32.totalorder %s1548_s7, %s1542_s5 }
  0x1e   : > { %219 = vadd.xlane.f32.xlu1 %v218_v7 }
  0x1f   : > { %p1545_p0 = pneg %p1544_p13  ;;  %p1551_p3 = por %p1550_p2, %p1549_p1 }
  0x21   : > { %216 = vadd.xlane.f32.xlu0 %v215_v10  ;;  %p1552_p5 = pnand %p1551_p3, %p1545_p0 }
  0x22   : > { %222 = vadd.xlane.f32.xlu1 %v221_v11 }
  0x25   : > { %611 = vmax.xlane.f32.xlu0 %v610_v12 }
  0x26   : > { %614 = vmax.xlane.f32.xlu1 %v613_v13 }
  0x29   : > { %617 = vmax.xlane.f32.xlu0 %v616_v14 }
  0x2a   : > { %620 = vmax.xlane.f32.xlu1 %v619_v15 }
  0xaa   : > { %v214_v30 = vpop.xlane.xlu0 %213 }
  0xab   : > { %v220_v32 = vpop.xlane.xlu1 %219  ;;  %v231_v33 = vrot.slane %v214_v30, %v1713_v22  ;;  %v235_v34 = vrot.slane %v214_v30, %v1716_v23  ;;  %v239_v35 = vrot.slane %v214_v30, %v1719_v24  ;;  %v243_v36 = vrot.slane %v214_v30, %v1722_v25 }
  0xac   : > { %v247_v37 = vrot.slane %v214_v30, %v1725_v26  ;;  %v251_v38 = vrot.slane %v214_v30, %v1728_v27  ;;  %v255_v39 = vrot.slane %v214_v30, %v1731_v28  ;;  %v259_v40 = vrot.slane %v214_v30, %v1734_v29 }
  0xad   : > { %v356_v41 = vcombine.low %v231_v33, %v235_v34  ;;  %v357_v42 = vcombine.low %v239_v35, %v243_v36  ;;  %v295_v43 = vrot.slane %v220_v32, %v1713_v22  ;;  %v299_v44 = vrot.slane %v220_v32, %v1716_v23 }
  0xae   : > { %v217_v45 = vpop.xlane.xlu0 %216  ;;  %v358_v46 = vcombine.low %v247_v37, %v251_v38  ;;  %v359_v47 = vcombine.low %v255_v39, %v259_v40  ;;  %v303_v48 = vrot.slane %v220_v32, %v1719_v24  ;;  %v307_v49 = vrot.slane %v220_v32, %v1722_v25 }
  0xaf   : > { %v366_v50 = vrot.slane %v356_v41, %v1737_v31  ;;  %v373_v51 = vrot.slane %v357_v42, %v1737_v31  ;;  %v263_v52 = vrot.slane %v217_v45, %v1713_v22  ;;  %v267_v53 = vrot.slane %v217_v45, %v1716_v23  ;;  %v223_v6 = vpop.xlane.xlu1 %222 }
  0xb0   : > { %v380_v54 = vrot.slane %v358_v46, %v1737_v31  ;;  %v387_v55 = vrot.slane %v359_v47, %v1737_v31  ;;  %v271_v56 = vrot.slane %v217_v45, %v1719_v24  ;;  %v275_v57 = vrot.slane %v217_v45, %v1722_v25 }
  0xb1   : > { %v388_v58 = vcombine.low %v366_v50, %v373_v51  ;;  %v279_v59 = vrot.slane %v217_v45, %v1725_v26  ;;  %v283_v60 = vrot.slane %v217_v45, %v1728_v27  ;;  %v287_v61 = vrot.slane %v217_v45, %v1731_v28 }
  0xb2   : > { %v389_v62 = vcombine.low %v380_v54, %v387_v55  ;;  %v291_v63 = vrot.slane %v217_v45, %v1734_v29  ;;  %v405_v0 = vcombine.low %v263_v52, %v267_v53  ;;  %v406_v1 = vcombine.low %v271_v56, %v275_v57  ;;  %v612_v42 = vpop.xlane.xlu0 %611 }
  0xb3   : > { %v396_v2 = vrot.slane %v388_v58, %v1737_v31  ;;  %v407_v3 = vcombine.low %v279_v59, %v283_v60  ;;  %v311_v4 = vrot.slane %v220_v32, %v1725_v26  ;;  %v315_v5 = vrot.slane %v220_v32, %v1728_v27  ;;  %v615_v59 = vpop.xlane.xlu1 %614 }
  0xb4   : > { %v403_v7 = vrot.slane %v389_v62, %v1737_v31  ;;  %v408_v8 = vcombine.low %v287_v61, %v291_v63  ;;  %v415_v9 = vrot.slane %v405_v0, %v1737_v31  ;;  %v422_v10 = vrot.slane %v406_v1, %v1737_v31 }
  0xb5   : > { %v429_v11 = vrot.slane %v407_v3, %v1737_v31  ;;  %v319_v12 = vrot.slane %v220_v32, %v1731_v28  ;;  %v323_v13 = vrot.slane %v220_v32, %v1734_v29  ;;  %v454_v14 = vcombine.low %v295_v43, %v299_v44 }
  0xb6   : > { %v404_v15 = vcombine.low %v396_v2, %v403_v7  ;;  %v436_v16 = vrot.slane %v408_v8, %v1737_v31  ;;  %v437_v18 = vcombine.low %v415_v9, %v422_v10  ;;  %v455_v19 = vcombine.low %v303_v48, %v307_v49 }
  0xb7   : > { %v456_v21 = vcombine.low %v311_v4, %v315_v5  ;;  %v457_v30 = vcombine.low %v319_v12, %v323_v13  ;;  %v464_v33 = vrot.slane %v454_v14, %v1737_v31  ;;  %v327_v34 = vrot.slane %v223_v6, %v1713_v22 }
  0xb8   : > { %553 = vperm.xlu0 %1536, %v404_v15   ;;  %v438_v35 = vcombine.low %v429_v11, %v436_v16  ;;  %v445_v36 = vrot.slane %v437_v18, %v1737_v31  ;;  %v471_v37 = vrot.slane %v455_v19, %v1737_v31  ;;  %v331_v32 = vrot.slane %v223_v6, %v1716_v23 }
  0xb9   : > { %v478_v38 = vrot.slane %v456_v21, %v1737_v31  ;;  %v485_v39 = vrot.slane %v457_v30, %v1737_v31  ;;  %v335_v40 = vrot.slane %v223_v6, %v1719_v24  ;;  %v339_v41 = vrot.slane %v223_v6, %v1722_v25  ;;  %v618_v30 = vpop.xlane.xlu0 %617 }
  0xba   : > { %v452_v43 = vrot.slane %v438_v35, %v1737_v31  ;;  %v486_v44 = vcombine.low %v464_v33, %v471_v37  ;;  %v343_v45 = vrot.slane %v223_v6, %v1725_v26  ;;  %v347_v46 = vrot.slane %v223_v6, %v1728_v27 }
  0xbb   : > { %v487_v47 = vcombine.low %v478_v38, %v485_v39  ;;  %v351_v48 = vrot.slane %v223_v6, %v1731_v28  ;;  %v355_v49 = vrot.slane %v223_v6, %v1734_v29  ;;  %v503_v50 = vcombine.low %v327_v34, %v331_v32 }
  0xbc   : > { %v453_v51 = vcombine.low %v445_v36, %v452_v43  ;;  %v494_v52 = vrot.slane %v486_v44, %v1737_v31  ;;  %v504_v53 = vcombine.low %v335_v40, %v339_v41  ;;  %v505_v54 = vcombine.low %v343_v45, %v347_v46 }
  0xbd   : > { %v501_v55 = vrot.slane %v487_v47, %v1737_v31  ;;  %v506_v56 = vcombine.low %v351_v48, %v355_v49  ;;  %v513_v57 = vrot.slane %v503_v50, %v1737_v31  ;;  %v629_v58 = vrot.slane %v612_v42, %v1713_v22 }
  0xbe   : > { %556 = vperm.xlu1 %1537, %v453_v51   ;;  %v520_v60 = vrot.slane %v504_v53, %v1737_v31  ;;  %v527_v61 = vrot.slane %v505_v54, %v1737_v31  ;;  %v633_v62 = vrot.slane %v612_v42, %v1716_v23  ;;  %v637_v63 = vrot.slane %v612_v42, %v1719_v24 }
  0xbf   : > { %v502_v0 = vcombine.low %v494_v52, %v501_v55  ;;  %v534_v1 = vrot.slane %v506_v56, %v1737_v31  ;;  %v641_v2 = vrot.slane %v612_v42, %v1722_v25  ;;  %v645_v3 = vrot.slane %v612_v42, %v1725_v26  ;;  %v621_v52 = vpop.xlane.xlu1 %620 }
  0xc0   : > { %v535_v4 = vcombine.low %v513_v57, %v520_v60  ;;  %v649_v5 = vrot.slane %v612_v42, %v1728_v27  ;;  %v653_v6 = vrot.slane %v612_v42, %v1731_v28  ;;  %v657_v7 = vrot.slane %v612_v42, %v1734_v29 }
  0xc1   : > { %v536_v8 = vcombine.low %v527_v61, %v534_v1  ;;  %v754_v9 = vcombine.low %v629_v58, %v633_v62  ;;  %v755_v10 = vcombine.low %v637_v63, %v641_v2  ;;  %v661_v11 = vrot.slane %v615_v59, %v1713_v22 }
  0xc2   : > { %559 = vperm.xlu1 %1537, %v502_v0   ;;  %v543_v12 = vrot.slane %v535_v4, %v1737_v31  ;;  %v756_v13 = vcombine.low %v645_v3, %v649_v5  ;;  %v757_v14 = vcombine.low %v653_v6, %v657_v7  ;;  %v665_v15 = vrot.slane %v615_v59, %v1716_v23 }
  0xc3   : > { %v550_v16 = vrot.slane %v536_v8, %v1737_v31  ;;  %v764_v18 = vrot.slane %v754_v9, %v1737_v31  ;;  %v771_v19 = vrot.slane %v755_v10, %v1737_v31  ;;  %v669_v21 = vrot.slane %v615_v59, %v1719_v24 }
  0xc4   : > { %v778_v33 = vrot.slane %v756_v13, %v1737_v31  ;;  %v785_v34 = vrot.slane %v757_v14, %v1737_v31  ;;  %v673_v35 = vrot.slane %v615_v59, %v1722_v25  ;;  %v677_v36 = vrot.slane %v615_v59, %v1725_v26 }
  0xc5   : > { %v551_v37 = vcombine.low %v543_v12, %v550_v16  ;;  %v786_v32 = vcombine.low %v764_v18, %v771_v19  ;;  %v681_v38 = vrot.slane %v615_v59, %v1728_v27  ;;  %v685_v39 = vrot.slane %v615_v59, %v1731_v28 }
  0xc6   : > { %v787_v40 = vcombine.low %v778_v33, %v785_v34  ;;  %v689_v41 = vrot.slane %v615_v59, %v1734_v29  ;;  %v803_v42 = vcombine.low %v661_v11, %v665_v15  ;;  %v804_v43 = vcombine.low %v669_v21, %v673_v35 }
  0xc7   : > { %562 = vperm.xlu1 %1537, %v551_v37   ;;  %v794_v44 = vrot.slane %v786_v32, %v1737_v31  ;;  %v805_v45 = vcombine.low %v677_v36, %v681_v38  ;;  %v693_v46 = vrot.slane %v618_v30, %v1713_v22  ;;  %v697_v47 = vrot.slane %v618_v30, %v1716_v23  ;;  %v1004_v37 = vld [vmem:[%s1952_s1] sm:$0xff]  ;;  %v1005_v32 = vld [vmem:[%s1952_s1 + $0x8] sm:$0xff] }
  0xc8   : > { %v801_v48 = vrot.slane %v787_v40, %v1737_v31  ;;  %v806_v49 = vcombine.low %v685_v39, %v689_v41  ;;  %v813_v50 = vrot.slane %v803_v42, %v1737_v31  ;;  %v820_v51 = vrot.slane %v804_v43, %v1737_v31 }
  0xc9   : > { %v827_v53 = vrot.slane %v805_v45, %v1737_v31  ;;  %v701_v54 = vrot.slane %v618_v30, %v1719_v24  ;;  %v705_v55 = vrot.slane %v618_v30, %v1722_v25  ;;  %v709_v56 = vrot.slane %v618_v30, %v1725_v26  ;;  %v1007_v45 = vld [vmem:[%s1952_s1 + $0x18] sm:$0xff] }
  0xca   : > { %v802_v57 = vcombine.low %v794_v44, %v801_v48  ;;  %v834_v58 = vrot.slane %v806_v49, %v1737_v31  ;;  %v835_v59 = vcombine.low %v813_v50, %v820_v51  ;;  %v713_v60 = vrot.slane %v618_v30, %v1728_v27  ;;  %v1006_v44 = vld [vmem:[%s1952_s1 + $0x10] sm:$0xff] }
  0xcb   : > { %v717_v61 = vrot.slane %v618_v30, %v1731_v28  ;;  %v721_v62 = vrot.slane %v618_v30, %v1734_v29  ;;  %v852_v63 = vcombine.low %v693_v46, %v697_v47  ;;  %v853_v0 = vcombine.low %v701_v54, %v705_v55 }
  0xcc   : > { %951 = vperm.xlu1 %1537, %v802_v57   ;;  %v836_v1 = vcombine.low %v827_v53, %v834_v58  ;;  %v843_v2 = vrot.slane %v835_v59, %v1737_v31  ;;  %v854_v3 = vcombine.low %v709_v56, %v713_v60  ;;  %v725_v4 = vrot.slane %v621_v52, %v1713_v22 }
  0xcd   : > { %v855_v5 = vcombine.low %v717_v61, %v721_v62  ;;  %v862_v6 = vrot.slane %v852_v63, %v1737_v31  ;;  %v869_v7 = vrot.slane %v853_v0, %v1737_v31  ;;  %v729_v8 = vrot.slane %v621_v52, %v1716_v23 }
  0xce   : > { %v850_v9 = vrot.slane %v836_v1, %v1737_v31  ;;  %v876_v10 = vrot.slane %v854_v3, %v1737_v31  ;;  %v733_v11 = vrot.slane %v621_v52, %v1719_v24  ;;  %v737_v12 = vrot.slane %v621_v52, %v1722_v25 }
  0xcf   : > { %v883_v13 = vrot.slane %v855_v5, %v1737_v31  ;;  %v884_v14 = vcombine.low %v862_v6, %v869_v7  ;;  %v741_v22 = vrot.slane %v621_v52, %v1725_v26  ;;  %v745_v15 = vrot.slane %v621_v52, %v1728_v27 }
  0xd0   : > { %v851_v16 = vcombine.low %v843_v2, %v850_v9  ;;  %v749_v18 = vrot.slane %v621_v52, %v1731_v28  ;;  %v753_v23 = vrot.slane %v621_v52, %v1734_v29  ;;  %v901_v19 = vcombine.low %v725_v4, %v729_v8 }
  0xd1   : > { %v885_v21 = vcombine.low %v876_v10, %v883_v13  ;;  %v892_v30 = vrot.slane %v884_v14, %v1737_v31  ;;  %v902_v33 = vcombine.low %v733_v11, %v737_v12  ;;  %v903_v24 = vcombine.low %v741_v22, %v745_v15 }
  0xd2   : > { %954 = vperm.xlu1 %1537, %v851_v16   ;;  %v904_v25 = vcombine.low %v749_v18, %v753_v23  ;;  %v911_v34 = vrot.slane %v901_v19, %v1737_v31  ;;  %v1624_v39 = vmov 0.0   ;;  %v1625_v41 = vmov 0.0|0.0  }
  0xd3   : > { %v899_v35 = vrot.slane %v885_v21, %v1737_v31  ;;  %v918_v26 = vrot.slane %v902_v33, %v1737_v31  ;;  %v925_v27 = vrot.slane %v903_v24, %v1737_v31  ;;  %201 = vst.msk [vmem:[#allocation2] sm:$0x1] %vm200_vm0, %v1624_v39  ;;  %1462 = vmatprep.subr.bf16.mxu0 %v1625_v41  ;;  %v1626_v47 = vmov -inf   ;;  %v1008_v24 = vld [vmem:[%s1953_s2] sm:$0xf] }
  0xd4   : > { %v932_v28 = vrot.slane %v904_v25, %v1737_v31  ;;  %v1463_v42 = vpack.c.bf16 %v1005_v32, %v1004_v37  ;;  %1468 = vmatprep.subr.bf16.mxu1 %v1625_v41  ;;  %202 = vst.msk [vmem:[#allocation3] sm:$0x1] %vm200_vm0, %v1626_v47  ;;  %v1466_v48 = vpack.c.bf16 %v1007_v45, %v1006_v44  ;;  %v565_v49 = vand.u32 127, %v228_v17 }
  0xd5   : > { %v900_v29 = vcombine.low %v892_v30, %v899_v35  ;;  %v933_v36 = vcombine.low %v911_v34, %v918_v26  ;;  %1438 = vmatprep.mubr.msk.f32.mxu0 %vm1627_vm1, %v1624_v39  ;;  %1449 = vmatprep.mubr.msk.f32.mxu1 %vm1627_vm1, %v1624_v39 }
  0xd6   : > { %v934_v38 = vcombine.low %v925_v27, %v932_v28  ;;  %1464 = vmatpush3.bf16.msra.mxu0 %v1463_v42  ;;  %1470 = vmatpush3.bf16.msra.mxu1 %v1463_v42  ;;  %v570_v50 = vadd.s32 4294967288, %v565_v49  ;;  %v577_v51 = vadd.s32 4294967280, %v565_v49  ;;  %v584_v54 = vadd.s32 4294967272, %v565_v49 }
  0xd7   : > { %957 = vperm.xlu1 %1537, %v900_v29   ;;  %v941_v40 = vrot.slane %v933_v36, %v1737_v31  ;;  %1465 = vmatprep.subr.bf16.mxu0 %v1625_v41  ;;  %v568_v56 = vsub.s32 %v565_v49, %v1710_v20 }
  0xd8   : > { %v948_v43 = vrot.slane %v934_v38, %v1737_v31  ;;  %1471 = vmatprep.subr.bf16.mxu1 %v1625_v41  ;;  %v573_v53 = vsub.s32 %v570_v50, %v1710_v20  ;;  %v580_v55 = vsub.s32 %v577_v51, %v1710_v20  ;;  %v587_v60 = vsub.s32 %v584_v54, %v1710_v20 }
  0xda   : > { %v949_v46 = vcombine.low %v941_v40, %v948_v43  ;;  %1467 = vmatpush3.bf16.msra.mxu0 %v1466_v48  ;;  %1473 = vmatpush3.bf16.msra.mxu1 %v1466_v48  ;;  %v211_v4 = vld [vmem:[#allocation2] sm:$0x1] }
  0xdb   : > { %1457 = vmatprep.subr.mxu0 %v1624_v39  ;;  %1452 = vmatprep.subr.mxu1 %v1624_v39  ;;  %v609_v19 = vld [vmem:[#allocation3] sm:$0x1] }
  0xdc   : > { %960 = vperm.xlu1 %1537, %v949_v46  }
 0x137   : > { %v554_v58 = vpop.permute.xlu0 %553 }
 0x138   : > { %v569_v62 = vrot.slane %v554_v58, %v568_v56 }
 0x13d   : > { %v557_v52 = vpop.permute.xlu1 %556 }
 0x13e   : > { %v574_v59 = vrot.slane %v557_v52, %v573_v53 }
 0x140   : > { %v576_v63 = vsel %vm575_vm2, %v574_v59, %v569_v62 }
 0x141   : > { %v560_v57 = vpop.permute.xlu1 %559 }
 0x142   : > { %v581_v61 = vrot.slane %v560_v57, %v580_v55 }
 0x144   : > { %v583_v1 = vsel %vm582_vm3, %v581_v61, %v576_v63 }
 0x146   : > { %v563_v17 = vpop.permute.xlu1 %562 }
 0x147   : > { %v588_v0 = vrot.slane %v563_v17, %v587_v60 }
 0x149   : > { %v590_v2 = vsel %vm589_vm4, %v588_v0, %v583_v1 }
 0x14a   : > { %v597_v3 = vrot.slane %v590_v2, %v1737_v31 }
 0x14b   : > { %v952_v5 = vpop.permute.xlu1 %951 }
 0x14c   : > { %v604_v6 = vrot.slane %v597_v3, %v1737_v31  ;;  %v965_v13 = vrot.slane %v952_v5, %v568_v56 }
 0x14e   : > { %v606_v20 = vadd.f32 %v604_v6, %v211_v4 }
 0x150   : > { %608 = vst.msk [vmem:[#allocation2] sm:$0x1] %vm200_vm0, %v606_v20 }
 0x151   : > { %v955_v7 = vpop.permute.xlu1 %954 }
 0x152   : > { %v969_v10 = vrot.slane %v955_v7, %v573_v53 }
 0x154   : > { %v970_v22 = vsel %vm575_vm2, %v969_v10, %v965_v13 }
 0x156   : > { %v958_v8 = vpop.permute.xlu1 %957 }
 0x157   : > { %v1001_v9 = vld [vmem:[#allocation2] sm:$0x1]  ;;  %v974_v12 = vrot.slane %v958_v8, %v580_v55 }
 0x158   : > { %v1002_v11 = vmul.f32 0.00390625, %v1001_v9 }
 0x159   : > { %v975_v16 = vsel %vm582_vm3, %v974_v12, %v970_v22 }
 0x15a   : > { %1439 = vmatmul.mubr.msk.f32.vlgmr.msra.gmra.mrb[0].mxu0 %vm1009_vm5, %v1002_v11 }
 0x15b   : > { %v961_v14 = vpop.permute.xlu1 %960  ;;  %1459 = vmatprep.mubr.msk.f32.mxu0 %vm1627_vm1, %v1624_v39  ;;  %1458 = vmatpush3.msk.msra.mxu0 %vm1162_vm6, %v1008_v24 }
 0x15c   : > { %v979_v15 = vrot.slane %v961_v14, %v587_v60 }
 0x15e   : > { %v980_v18 = vsel %vm589_vm4, %v979_v15, %v975_v16 }
 0x15f   : > { %v987_v23 = vrot.slane %v980_v18, %v1737_v31 }
 0x161   : > { %v994_v21 = vrot.slane %v987_v23, %v1737_v31 }
 0x163   : > { %v996_v30 = vmax.f32 %v609_v19, %v994_v21 }
 0x165   : > { %997 = vst.msk [vmem:[#allocation3] sm:$0x1] %vm200_vm0, %v996_v30 }
 0x16c   : > { %v1003_v33 = vld [vmem:[#allocation3] sm:$0x1] }
 0x16d   : > { %1450 = vmatmul.mubr.msk.f32.vlgmr.msra.gmra.mrb[0].mxu1 %vm1009_vm5, %v1003_v33 }
 0x16e   : > { %1454 = vmatprep.mubr.msk.f32.mxu1 %vm1627_vm1, %v1624_v39  ;;  %1453 = vmatpush3.msk.msra.mxu1 %vm1162_vm6, %v1008_v24 }
 0x22d   : > { %v1079_v25 = vpop.f32.mrb[0].mxu0 }
 0x22e   : > { %v1083_v34 = vmax.f32 %v1079_v25, 0.0  ;;  %v1440_v31 = vpop.f32.mrb[1].mxu0 }
 0x230   : > { %1460 = vmatmul.mubr.msk.f32.vlgmr.msra.gmra.mrb[2].mxu0 %vm1158_vm7, %v1083_v34 }
 0x240   : > { %v1153_v35 = vpop.f32.mrb[0].mxu1 }
 0x241   : > { %v1157_v26 = vmax.f32 %v1153_v35, 0.0  ;;  %v1451_v27 = vpop.f32.mrb[1].mxu1 }
 0x243   : > { %1455 = vmatmul.mubr.msk.f32.vlgmr.msra.gmra.mrb[2].mxu1 %vm1158_vm7, %v1157_v26 }
 0x303   : > { %v1305_v28 = vpop.f32.mrb[2].mxu0 }
 0x304   : > { %v1461_v29 = vpop.f32.mrb[3].mxu0 }
 0x316   : > { %v1232_v36 = vpop.f32.mrb[2].mxu1 }
 0x317   : > { %v1306_v37 = vadd.f32 %v1305_v28, %v1232_v36  ;;  %v1456_v32 = vpop.f32.mrb[3].mxu1 }
 0x319   : > { %v1411_v38 = vmul.f32 -1.442695, %v1306_v37 }
 0x31b   : > { %1538 = vpow2.f32 %v1411_v38 }
 0x325   : > { %v1539_v39 = vpop.eup %1538 }
 0x326   : > { %v1312_v40 = vadd.f32 1.0, %v1539_v39 }
 0x328   : > { %1540 = vrcp.f32 %v1312_v40 }
 0x332   : > { %v1541_v41 = vpop.eup %1540 }
 0x333   : > { %1315 = vst.msk [vmem:[%s185_s26] sm:$0x1] %vm200_vm0, %v1541_v41 }
 0x334   : > { %1555 = shalt.err (!%p1552_p5)
}
 0x335   : > { %s1556_s8 = scalar_lea.hbm %s1903_s30, 16  ;;  %s1560_s11 = scalar_lea.hbm %s1954_s3, 32 }
 0x336   : > { %p1557_p6 = scmp.ne.s32.totalorder %s1903_s30, %s1556_s8  ;;  %p1561_p10 = scmp.lt.u32.totalorder %s1903_s30, %s1954_s3 }
 0x337   : > { %p1562_p11 = scmp.lt.u32.totalorder %s1560_s11, %s1556_s8  ;;  %p1564_p13 = scmp.lt.u32.totalorder %s1556_s8, %s1903_s30 }
 0x338   : > { %p1558_p7 = pnand %p1557_p6, %p1689_p4 }
 0x339   : > { %p1563_p12 = por %p1562_p11, %p1561_p10 }
 0x33a   : > { %p1559_p9 = pneg %p1558_p7 }
 0x33b   : > { %p1565_p0 = por %p1564_p13, %p1563_p12 }
 0x33d   : > { %p1566_p1 = pnand %p1565_p0, %p1559_p9 }
 0x33f   : > { %1569 = shalt.err (!%p1566_p1)
}
 0x340   : > { %1475 = dma.vmem_to_hbm [thread:$0]  (%p1689_p4), %s1905_s27, 16, %s1903_s30, %s1317_s4  }
 0x341 PF: > { %p1481_p2 = scmp.ge.s32.totalorder %s1620_s17, 2  ;;  %s1341_s21 = sand.u32 1, %s1600_s12  }
 0x342   : > { %s1342_s23 = scalar_lea.sflag [#allocation5], %s1341_s21 }
 0x343   : > { %p1478_p3 = pnand %p1481_p2, %p1696_p8 }
 0x345   : > { %1595 = dma.done.wait (!%p1478_p3), %s1342_s23, 16  }
 0x346   : > { %1597 = vsyncadd (!%p1478_p3), %s1342_s23, 4294967280  ;;  %s16_s17 = sadd.s32 1, %s1620_s17   ;;  %s1957_s12 = smov %s1604_s13 }
 0x347   : > { %p13_p5 = scmp.ge.s32.totalorder %s16_s17, 4   ;;  %s1958_s13 = smov %s1608_s14 }
 0x348   : > { %s1959_s14 = smov %s1702_s25  ;;  %s1960_s15 = smov %s1616_s16 }
 0x349   : > { %s1961_s16 = smov %s1963_s20  ;;  %15 = sbr.rel (!%p13_p5) target bundleno = 4 (0x4), region = 75 }
 0x350   :  { %1346 = vsyncpa [#allocation5], 1 }
 0x351   :  { %1348 = vsyncpa [#allocation5 + $0x1], 1 }

</bundles_post_ra>
